<compile_context>
chip_gen: v7x
topology: tpu7x:2x2x1
jax: 0.10.0
libtpu: 0.0.40
codegen_flags: <defaults>
</compile_context>

<pallas_src>
import jax
import jax.numpy as jnp
from jax.experimental import pallas as pl
from jax.experimental.pallas import tpu as pltpu


def _round_up(n, m):
    return ((n + m - 1) // m) * m


def _critic_kernel(x_ref, w1_ref, b1_ref, w2_ref, b2_ref, w3_ref, o_ref):
    cd = x_ref.dtype  # MXU compute dtype (bf16 by default, f32 for exact path)
    # fc1 + ReLU: (128, d_obs) @ (d_obs, TB) -> (128, TB), f32 accumulate.
    # Context is already folded into b1 (wrapper), so no concat / context rows.
    h1 = jnp.dot(w1_ref[...], x_ref[...], preferred_element_type=jnp.float32)
    h1 = jnp.maximum(h1 + b1_ref[...], 0.0)                      # f32 VPU
    # fc2 + ReLU: (64, 128) @ (128, TB) -> (64, TB).
    h2 = jnp.dot(w2_ref[...], h1.astype(cd), preferred_element_type=jnp.float32)
    h2 = jnp.maximum(h2 + b2_ref[...], 0.0)                      # f32 VPU
    # value head: (1, 64) @ (64, TB) -> (1, TB).  Lane-dense output row; the
    # scalar b3 is added in the wrapper.
    o_ref[...] = jnp.dot(w3_ref[...], h2.astype(cd),
                         preferred_element_type=jnp.float32)


def critic_forward(x, context, params, *, max_tile=2048, grid_target=4,
                   compute_dtype=jnp.bfloat16):
    """x: [B, total_obs_dim] f32; context: [C] f32; returns [B, 1] f32."""
    w1, b1, w2, b2, w3, b3 = params
    x = x.astype(jnp.float32)
    B, d_obs = x.shape

    # Fold the broadcast context into the fc1 bias: one [1,C]@[C,128] matvec in
    # the wrapper removes the concat and the context columns from the per-row
    # HBM stream.
    ctx = context.reshape(1, -1).astype(jnp.float32)
    b1_eff = b1 + ctx @ w1[d_obs:, :]                       # (1, 128) f32

    # Transposed ("batch in lanes") operands.  The x transpose fuses with the
    # compute_dtype cast, so with bf16 it is not an extra pass over x.
    xT = x.T.astype(compute_dtype)                          # (d_obs, B)
    w1T = w1[:d_obs, :].T.astype(compute_dtype)             # (128, d_obs)
    w2T = w2.T.astype(compute_dtype)                        # (64, 128)
    w3r = w3.reshape(1, -1).astype(compute_dtype)           # (1, 64)
    b1c = b1_eff.T                                          # (128, 1) f32
    b2c = b2.reshape(-1, 1).astype(jnp.float32)             # (64, 1)  f32

    # Batch tile: multiple of 128 lanes, up to max_tile, targeting at least
    # grid_target grid steps (>= 2 needed for the v7x 2-TC "parallel" split).
    TB = min(max_tile, _round_up(pl.cdiv(B, grid_target), 128))
    if TB >= B:
        TB = B  # single exact block (block == full array dim is always legal)
    grid = (pl.cdiv(B, TB),)

    def resident(arr):
        # Tiny weights/biases: same block every grid step -> stays VMEM-resident.
        return pl.BlockSpec(arr.shape, lambda i: (0, 0))

    out = pl.pallas_call(
        _critic_kernel,
        out_shape=jax.ShapeDtypeStruct((1, B), jnp.float32),
        grid=grid,
        in_specs=[
            pl.BlockSpec((d_obs, TB), lambda i: (0, i)),    # x^T tiled over batch lanes
            resident(w1T),
            resident(b1c),
            resident(w2T),
            resident(b2c),
            resident(w3r),
        ],
        out_specs=pl.BlockSpec((1, TB), lambda i: (0, i)),  # lane-dense value row
        compiler_params=pltpu.CompilerParams(
            dimension_semantics=("parallel",),              # megacore / v7x 2-TC split
        ),
    )(xT, w1T, b1c, w2T, b2c, w3r)

    # value_head bias folded here instead of a (1,1) resident block in-kernel.
    return out.reshape(B, 1) + b3


def init_params(key, total_obs_dim, context_len):
    """Deterministic init mirroring nn.Linear shapes (stored as (in, out))."""
    d_in = total_obs_dim + context_len
    k1, k2, k3, k4, k5, k6 = jax.random.split(key, 6)

    def unif(k, shape, fan_in):
        bound = 1.0 / jnp.sqrt(jnp.float32(fan_in))
        return jax.random.uniform(k, shape, jnp.float32, -bound, bound)

    w1 = unif(k1, (d_in, 128), d_in)    # fc1: Linear(d_in, 128)
    b1 = unif(k2, (1, 128), d_in)
    w2 = unif(k3, (128, 64), 128)       # fc2: Linear(128, 64)
    b2 = unif(k4, (1, 64), 128)
    w3 = unif(k5, (64, 1), 64)          # value_head: Linear(64, 1)
    b3 = unif(k6, (1, 1), 64)
    return (w1, b1, w2, b2, w3, b3)


def _reference(x, context, params):
    """Plain-JAX mirror of the original module: concat + 3 Linears + ReLUs."""
    w1, b1, w2, b2, w3, b3 = params
    ctx = jnp.broadcast_to(context.reshape(1, -1), (x.shape[0], context.shape[0]))
    xc = jnp.concatenate([x, ctx], axis=-1)
    h1 = jnp.maximum(xc @ w1 + b1, 0.0)
    h2 = jnp.maximum(h1 @ w2 + b2, 0.0)
    return h2 @ w3 + b3


if __name__ == "__main__":
    key = jax.random.PRNGKey(0)
    total_obs_dim = 16
    context_len = 4

    k_x, k_ctx, k_p, k_x2 = jax.random.split(key, 4)
    context = jax.random.normal(k_ctx, (context_len,), jnp.float32)
    params = init_params(k_p, total_obs_dim, context_len)

    # Small batch (grid = 1) and a larger batch exercising a 4-step
    # "parallel" grid with resident weights across steps.
    x_small = jax.random.normal(k_x, (2, total_obs_dim), jnp.float32)
    x_big = jax.random.normal(k_x2, (512, total_obs_dim), jnp.float32)

    for x in (x_small, x_big):
        ref = _reference(x, context, params)

        # Exact path (f32 MXU operands) -> tight tolerance.
        v32 = critic_forward(x, context, params, compute_dtype=jnp.float32)
        jax.block_until_ready(v32)
        assert v32.shape == (x.shape[0], 1)
        assert jnp.allclose(v32, ref, atol=1e-5, rtol=1e-5)

        # Default perf path (bf16 MXU operands, f32 accumulate) -> relaxed tol.
        vbf = critic_forward(x, context, params)
        jax.block_until_ready(vbf)
        assert vbf.shape == (x.shape[0], 1)
        assert jnp.allclose(vbf, ref, atol=5e-2, rtol=5e-2)

    print("KERNEL_OK")
</pallas_src>

<mosaic_0001>
module attributes {stable_mosaic.version = 11 : i64} {
  func.func @_critic_kernel(%arg0: i32, %arg1: memref<16x2xf32, #tpu.memory_space<vmem>>, %arg2: memref<128x16xf32, #tpu.memory_space<vmem>>, %arg3: memref<128x1xf32, #tpu.memory_space<vmem>>, %arg4: memref<64x128xf32, #tpu.memory_space<vmem>>, %arg5: memref<64x1xf32, #tpu.memory_space<vmem>>, %arg6: memref<1x64xf32, #tpu.memory_space<vmem>>, %arg7: memref<1x2xf32, #tpu.memory_space<vmem>>) attributes {dimension_semantics = [#tpu.dimension_semantics<parallel>], iteration_bounds = array<i64: 1>, scalar_prefetch = 0 : i64, scratch_operands = 0 : i64, tpu.core_type = #tpu.core_type<tc>, window_params = [{transform_indices = @transform_0, window_bounds = array<i64: 16, 2>}, {pipeline_mode = #tpu.pipeline_mode<synchronous>, transform_indices = @transform_1, window_bounds = array<i64: 128, 16>}, {pipeline_mode = #tpu.pipeline_mode<synchronous>, transform_indices = @transform_2, window_bounds = array<i64: 128, 1>}, {pipeline_mode = #tpu.pipeline_mode<synchronous>, transform_indices = @transform_3, window_bounds = array<i64: 64, 128>}, {pipeline_mode = #tpu.pipeline_mode<synchronous>, transform_indices = @transform_4, window_bounds = array<i64: 64, 1>}, {pipeline_mode = #tpu.pipeline_mode<synchronous>, transform_indices = @transform_5, window_bounds = array<i64: 1, 64>}, {transform_indices = @transform_6, window_bounds = array<i64: 1, 2>}]} {
    %c0 = arith.constant 0 : index
    %c0_0 = arith.constant 0 : index
    %0 = vector.load %arg2[%c0, %c0_0] : memref<128x16xf32, #tpu.memory_space<vmem>>, vector<128x16xf32>
    %c0_1 = arith.constant 0 : index
    %c0_2 = arith.constant 0 : index
    %1 = vector.load %arg1[%c0_1, %c0_2] : memref<16x2xf32, #tpu.memory_space<vmem>>, vector<16x2xf32>
    %cst = arith.constant dense<0.000000e+00> : vector<128x2xf32>
    %2 = tpu.matmul %0, %1, %cst {dimension_numbers = #tpu.dot_dimension_numbers<[1], [0], [0], [1], [0, 0, 1, 1], [], []>} : vector<128x16xf32>, vector<16x2xf32>, vector<128x2xf32> -> vector<128x2xf32>
    %c0_3 = arith.constant 0 : index
    %c0_4 = arith.constant 0 : index
    %3 = vector.load %arg3[%c0_3, %c0_4] : memref<128x1xf32, #tpu.memory_space<vmem>>, vector<128x1xf32>
    %4 = vector.broadcast %3 : vector<128x1xf32> to vector<128x2xf32>
    %5 = arith.addf %2, %4 : vector<128x2xf32>
    %cst_5 = arith.constant 0.000000e+00 : f32
    %6 = vector.broadcast %cst_5 : f32 to vector<128x2xf32>
    %7 = arith.maximumf %5, %6 : vector<128x2xf32>
    %c0_6 = arith.constant 0 : index
    %c0_7 = arith.constant 0 : index
    %8 = vector.load %arg4[%c0_6, %c0_7] : memref<64x128xf32, #tpu.memory_space<vmem>>, vector<64x128xf32>
    %cst_8 = arith.constant dense<0.000000e+00> : vector<64x2xf32>
    %9 = tpu.matmul %8, %7, %cst_8 {dimension_numbers = #tpu.dot_dimension_numbers<[1], [0], [0], [1], [0, 0, 1, 1], [], []>} : vector<64x128xf32>, vector<128x2xf32>, vector<64x2xf32> -> vector<64x2xf32>
    %c0_9 = arith.constant 0 : index
    %c0_10 = arith.constant 0 : index
    %10 = vector.load %arg5[%c0_9, %c0_10] : memref<64x1xf32, #tpu.memory_space<vmem>>, vector<64x1xf32>
    %11 = vector.broadcast %10 : vector<64x1xf32> to vector<64x2xf32>
    %12 = arith.addf %9, %11 : vector<64x2xf32>
    %cst_11 = arith.constant 0.000000e+00 : f32
    %13 = vector.broadcast %cst_11 : f32 to vector<64x2xf32>
    %14 = arith.maximumf %12, %13 : vector<64x2xf32>
    %c0_12 = arith.constant 0 : index
    %c0_13 = arith.constant 0 : index
    %15 = vector.load %arg6[%c0_12, %c0_13] : memref<1x64xf32, #tpu.memory_space<vmem>>, vector<1x64xf32>
    %cst_14 = arith.constant dense<0.000000e+00> : vector<1x2xf32>
    %16 = tpu.matmul %15, %14, %cst_14 {dimension_numbers = #tpu.dot_dimension_numbers<[1], [0], [0], [1], [0, 0, 1, 1], [], []>} : vector<1x64xf32>, vector<64x2xf32>, vector<1x2xf32> -> vector<1x2xf32>
    %c0_15 = arith.constant 0 : index
    %c0_16 = arith.constant 0 : index
    %17 = vector.load %arg7[%c0_15, %c0_16] : memref<1x2xf32, #tpu.memory_space<vmem>>, vector<1x2xf32>
    tpu.vector_store %arg7[%c0_15, %c0_16], %16 {strides = array<i32>} : memref<1x2xf32, #tpu.memory_space<vmem>>, vector<1x2xf32>,
    return
  }
  func.func @transform_0(%arg0: i32) -> (i32, i32) {
    %c0_i32 = arith.constant 0 : i32
    %c0_i32_0 = arith.constant 0 : i32
    return %c0_i32, %arg0 : i32, i32
  }
  func.func @transform_1(%arg0: i32) -> (i32, i32) {
    %c0_i32 = arith.constant 0 : i32
    %c0_i32_0 = arith.constant 0 : i32
    %c0_i32_1 = arith.constant 0 : i32
    return %c0_i32, %c0_i32_0 : i32, i32
  }
  func.func @transform_2(%arg0: i32) -> (i32, i32) {
    %c0_i32 = arith.constant 0 : i32
    %c0_i32_0 = arith.constant 0 : i32
    %c0_i32_1 = arith.constant 0 : i32
    return %c0_i32, %c0_i32_0 : i32, i32
  }
  func.func @transform_3(%arg0: i32) -> (i32, i32) {
    %c0_i32 = arith.constant 0 : i32
    %c0_i32_0 = arith.constant 0 : i32
    %c0_i32_1 = arith.constant 0 : i32
    return %c0_i32, %c0_i32_0 : i32, i32
  }
  func.func @transform_4(%arg0: i32) -> (i32, i32) {
    %c0_i32 = arith.constant 0 : i32
    %c0_i32_0 = arith.constant 0 : i32
    %c0_i32_1 = arith.constant 0 : i32
    return %c0_i32, %c0_i32_0 : i32, i32
  }
  func.func @transform_5(%arg0: i32) -> (i32, i32) {
    %c0_i32 = arith.constant 0 : i32
    %c0_i32_0 = arith.constant 0 : i32
    %c0_i32_1 = arith.constant 0 : i32
    return %c0_i32, %c0_i32_0 : i32, i32
  }
  func.func @transform_6(%arg0: i32) -> (i32, i32) {
    %c0_i32 = arith.constant 0 : i32
    %c0_i32_0 = arith.constant 0 : i32
    return %c0_i32, %arg0 : i32, i32
  }
}

</mosaic_0001>

<bundles_post_ra>
// kernel: tpu_custom_call.1
= control target key start
LH: loop header
LB: loop body
LE: loop exit
PB: predicated region body
PF: predicated region fallthrough
CT: control target
= control target key end

     0   :  { %vm138_vm0 = vcmask 130048   ;;  %v846_v4 = vmov 0   ;;  %s1067_s0 = inlined_call_operand.vmem [shape: f32[16,2], index: 0, kind: input, shape index: {}]   ;;  %s1068_s1 = inlined_call_operand.vmem [shape: f32[128,16], index: 1, kind: input, shape index: {}]   ;;  %s1069_s2 = inlined_call_operand.vmem [shape: f32[128,1], index: 2, kind: input, shape index: {}]   ;;  %s1070_s3 = inlined_call_operand.vmem [shape: f32[64,128], index: 3, kind: input, shape index: {}]   ;;  %s1071_s4 = inlined_call_operand.vmem [shape: f32[64,1], index: 4, kind: input, shape index: {}]   ;;  %s1072_s5 = inlined_call_operand.vmem [shape: f32[1,64], index: 5, kind: input, shape index: {}]   ;;  %s1073_s6 = inlined_call_operand.hbm [shape: f32[1,2], index: 6, kind: output, shape index: {}]  }
   0x1   :  { %v40_v0 = vld [vmem:[%s1067_s0] sm:$0xff]  ;;  %v41_v1 = vld [vmem:[%s1067_s0 + $0x8] sm:$0xff]  ;;  %820 = vset.pattern.permute.xlu0 %v846_v4  ;;  %821 = vset.pattern.permute.xlu1 %v846_v4  ;;  %v26_v6 = vld [vmem:[%s1068_s1 + $0x10] sm:$0xff] }
   0x2   :  { %v24_v2 = vld [vmem:[%s1068_s1] sm:$0xff]  ;;  %v767_v3 = vpack.c.bf16 %v41_v1, %v40_v0  ;;  %v25_v5 = vld [vmem:[%s1068_s1 + $0x8] sm:$0xff]  ;;  %v44_v8 = vld [vmem:[%s1069_s2 + $0x10] sm:$0xff] }
   0x3   :  { %680 = vmatprep.mubr.msk.f32.mxu0 %vm138_vm0, %v24_v2  ;;  %v42_v7 = vld [vmem:[%s1069_s2] sm:$0xff]  ;;  %v27_v9 = vld [vmem:[%s1068_s1 + $0x18] sm:$0xff]  ;;  %70 = vperm.xlu1 %821, %v44_v8   ;;  %v43_v10 = vld [vmem:[%s1069_s2 + $0x8] sm:$0xff] }
   0x4   :  { %768 = vmatprep.subr.bf16.mxu0 %v767_v3  ;;  %60 = vperm.xlu0 %820, %v42_v7   ;;  %v28_v11 = vld [vmem:[%s1068_s1 + $0x20] sm:$0xff]  ;;  %v45_v12 = vld [vmem:[%s1069_s2 + $0x18] sm:$0xff]  ;;  %v29_v13 = vld [vmem:[%s1068_s1 + $0x28] sm:$0xff] }
   0x5   :  { %770 = vmatpush3.bf16.msra.mxu0 %v767_v3  ;;  %v46_v14 = vld [vmem:[%s1069_s2 + $0x20] sm:$0xff]  ;;  %v30_v15 = vld [vmem:[%s1068_s1 + $0x30] sm:$0xff]  ;;  %v47_v16 = vld [vmem:[%s1069_s2 + $0x28] sm:$0xff] }
   0x7   :  { %75 = vperm.xlu1 %821, %v45_v12  }
   0x8   :  { %681 = vmatmul.mubr.msk.f32.vlgmr.msra.gmra.mrb[0].mxu0 %vm138_vm0, %v25_v5  ;;  %65 = vperm.xlu0 %820, %v43_v10  }
   0x9   :  { %683 = vmatprep.mubr.msk.f32.mxu0 %vm138_vm0, %v26_v6 }
   0xc   :  { %684 = vmatmul.mubr.msk.f32.gmra.mrb[2].mxu0 %vm138_vm0, %v27_v9 }
   0xd   :  { %686 = vmatprep.mubr.msk.f32.mxu0 %vm138_vm0, %v28_v11 }
   0xe   :  { %11 = vsyncpa [#allocation3], 0  ;;  %80 = vperm.xlu0 %820, %v46_v14   ;;  %v31_v17 = vld [vmem:[%s1068_s1 + $0x38] sm:$0xff]  ;;  %85 = vperm.xlu1 %821, %v47_v16   ;;  %v48_v18 = vld [vmem:[%s1069_s2 + $0x30] sm:$0xff]  ;;  %vm848_vm1 = vmmov 0   ;;  %vm518_vm2 = vcmask 523264  }
   0xf   :  { %v32_v19 = vld [vmem:[%s1068_s1 + $0x40] sm:$0xff]  ;;  %v49_v20 = vld [vmem:[%s1069_s2 + $0x38] sm:$0xff]  ;;  %v33_v21 = vld [vmem:[%s1068_s1 + $0x48] sm:$0xff]  ;;  %s850_s18 = smov [#allocation2]   ;;  %vm592_vm3 = vcmask 8192  }
  0x10   :  { %687 = vmatmul.mubr.msk.f32.gmra.mrb[4].mxu0 %vm138_vm0, %v29_v13  ;;  %v50_v22 = vld [vmem:[%s1069_s2 + $0x40] sm:$0xff]  ;;  %v34_v23 = vld [vmem:[%s1068_s1 + $0x50] sm:$0xff]  ;;  %v51_v24 = vld [vmem:[%s1069_s2 + $0x48] sm:$0xff]  ;;  %s600_s19 = sshll.u32 %s850_s18, 4  ;;  %s601_s19 = int_to_ptr.vmem [resolvable:$true] %s600_s19 }
  0x11   :  { %689 = vmatprep.mubr.msk.f32.mxu0 %vm138_vm0, %v30_v15  ;;  %v35_v25 = vld [vmem:[%s1068_s1 + $0x58] sm:$0xff]  ;;  %v52_v26 = vld [vmem:[%s1069_s2 + $0x50] sm:$0xff]  ;;  %v36_v27 = vld [vmem:[%s1068_s1 + $0x60] sm:$0xff]  ;;  %s826_s20 = scalar_lea.vmem %s601_s19, 32  ;;  %p827_p1 = scmp.lt.s32.totalorder %s601_s19, %s601_s19 }
  0x12   :  { %90 = vperm.xlu0 %820, %v48_v18   ;;  %95 = vperm.xlu1 %821, %v49_v20   ;;  %v53_v28 = vld [vmem:[%s1069_s2 + $0x58] sm:$0xff]  ;;  %v37_v29 = vld [vmem:[%s1068_s1 + $0x68] sm:$0xff]  ;;  %v54_v30 = vld [vmem:[%s1069_s2 + $0x60] sm:$0xff] }
  0x13   :  { %v38_v31 = vld [vmem:[%s1068_s1 + $0x70] sm:$0xff]  ;;  %v55_v32 = vld [vmem:[%s1069_s2 + $0x68] sm:$0xff]  ;;  %v39_v33 = vld [vmem:[%s1068_s1 + $0x78] sm:$0xff] }
  0x14   :  { %690 = vmatmul.mubr.msk.f32.gmra.mrb[6].mxu0 %vm138_vm0, %v31_v17  ;;  %v56_v34 = vld [vmem:[%s1069_s2 + $0x70] sm:$0xff]  ;;  %v57_v35 = vld [vmem:[%s1069_s2 + $0x78] sm:$0xff]  ;;  %v356_v36 = vld [vmem:[%s1071_s4] sm:$0xff]  ;;  %s822_s2 = scalar_lea.vmem %s601_s19, 16 }
  0x15   :  { %692 = vmatprep.mubr.msk.f32.mxu0 %vm138_vm0, %v32_v19  ;;  %v357_v37 = vld [vmem:[%s1071_s4 + $0x8] sm:$0xff]  ;;  %v358_v38 = vld [vmem:[%s1071_s4 + $0x10] sm:$0xff]  ;;  %v359_v39 = vld [vmem:[%s1071_s4 + $0x18] sm:$0xff]  ;;  %p823_p0 = scmp.ne.s32.totalorder %s601_s19, %s822_s2  ;;  %p828_p2 = scmp.lt.s32.totalorder %s826_s20, %s822_s2 }
  0x16   :  { %100 = vperm.xlu0 %820, %v50_v22   ;;  %105 = vperm.xlu1 %821, %v51_v24   ;;  %v360_v40 = vld [vmem:[%s1071_s4 + $0x20] sm:$0xff]  ;;  %v361_v41 = vld [vmem:[%s1071_s4 + $0x28] sm:$0xff]  ;;  %v362_v42 = vld [vmem:[%s1071_s4 + $0x30] sm:$0xff] }
  0x17   :  { %v363_v43 = vld [vmem:[%s1071_s4 + $0x38] sm:$0xff]  ;;  %v348_v44 = vld [vmem:[%s1070_s3] sm:$0xff]  ;;  %p829_p3 = por %p828_p2, %p827_p1 }
  0x18   :  { %693 = vmatmul.mubr.msk.f32.gmra.mrb[8].mxu0 %vm138_vm0, %v33_v21  ;;  %736 = vmatprep.mubr.f32.mxu1 %v348_v44 }
  0x19   :  { %695 = vmatprep.mubr.msk.f32.mxu0 %vm138_vm0, %v34_v23  ;;  %p830_p4 = pnand %p829_p3, %p823_p0 }
  0x1a   :  { %110 = vperm.xlu0 %820, %v52_v26   ;;  %115 = vperm.xlu1 %821, %v53_v28  }
  0x1c   :  { %696 = vmatmul.mubr.msk.f32.gmra.mrb[10].mxu0 %vm138_vm0, %v35_v25 }
  0x1d   :  { %698 = vmatprep.mubr.msk.f32.mxu0 %vm138_vm0, %v36_v27 }
  0x1e   :  { %120 = vperm.xlu0 %820, %v54_v30   ;;  %125 = vperm.xlu1 %821, %v55_v32  }
  0x20   :  { %699 = vmatmul.mubr.msk.f32.gmra.mrb[12].mxu0 %vm138_vm0, %v37_v29 }
  0x21   :  { %701 = vmatprep.mubr.msk.f32.mxu0 %vm138_vm0, %v38_v31 }
  0x22   :  { %130 = vperm.xlu0 %820, %v56_v34   ;;  %135 = vperm.xlu1 %821, %v57_v35  }
  0x24   :  { %702 = vmatmul.mubr.msk.f32.gmra.mrb[14].mxu0 %vm138_vm0, %v39_v33 }
  0x26   :  { %366 = vperm.xlu0 %820, %v356_v36   ;;  %371 = vperm.xlu1 %821, %v357_v37  }
  0x2a   :  { %376 = vperm.xlu0 %820, %v358_v38   ;;  %381 = vperm.xlu1 %821, %v359_v39  }
  0x2e   :  { %386 = vperm.xlu0 %820, %v360_v40   ;;  %391 = vperm.xlu1 %821, %v361_v41  }
  0x32   :  { %396 = vperm.xlu0 %820, %v362_v42   ;;  %401 = vperm.xlu1 %821, %v363_v43  }
  0x82   :  { %v71_v45 = vpop.permute.xlu1 %70 }
  0x83   :  { %v61_v46 = vpop.permute.xlu0 %60 }
  0x86   :  { %v76_v47 = vpop.permute.xlu1 %75 }
  0x87   :  { %v66_v48 = vpop.permute.xlu0 %65 }
  0x8d   :  { %v86_v49 = vpop.permute.xlu1 %85  ;;  %v81_v50 = vpop.permute.xlu0 %80 }
  0x91   :  { %v96_v56 = vpop.permute.xlu1 %95  ;;  %v91_v59 = vpop.permute.xlu0 %90 }
  0x95   :  { %v106_v5 = vpop.permute.xlu1 %105  ;;  %v101_v8 = vpop.permute.xlu0 %100 }
  0x99   :  { %v116_v17 = vpop.permute.xlu1 %115  ;;  %v111_v20 = vpop.permute.xlu0 %110 }
  0x9d   :  { %v126_v30 = vpop.permute.xlu1 %125  ;;  %v121_v33 = vpop.permute.xlu0 %120 }
  0xa1   :  { %v136_v42 = vpop.permute.xlu1 %135 }
  0xdb   :  { %v682_v51 = vpop.f32.mrb[0].mxu0 }
  0xdc   :  { %v259_v52 = vadd.f32 %v682_v51, %v66_v48  ;;  %v253_v53 = vpop.f32.mrb[1].mxu0 }
  0xdd   :  { %v254_v54 = vadd.f32 %v253_v53, %v61_v46  ;;  %v349_v53 = vld [vmem:[%s1070_s3 + $0x8] sm:$0xff] }
  0xde   :  { %v333_v55 = vmax.f32 %v259_v52, 0.0 }
  0xdf   :  { %v332_v57 = vmax.f32 %v254_v54, 0.0  ;;  %v685_v58 = vpop.f32.mrb[2].mxu0  ;;  %v350_v54 = vld [vmem:[%s1070_s3 + $0x10] sm:$0xff] }
  0xe0   :  { %v269_v60 = vadd.f32 %v685_v58, %v76_v47  ;;  %v263_v61 = vpop.f32.mrb[3].mxu0  ;;  %v354_v58 = vld [vmem:[%s1070_s3 + $0x30] sm:$0xff] }
  0xe1   :  { %v264_v62 = vadd.f32 %v263_v61, %v71_v45  ;;  %v771_v63 = vpack.c.bf16 %v333_v55, %v332_v57  ;;  %v131_v45 = vpop.permute.xlu0 %130  ;;  %v351_v55 = vld [vmem:[%s1070_s3 + $0x18] sm:$0xff]  ;;  %v353_v57 = vld [vmem:[%s1070_s3 + $0x28] sm:$0xff]  ;;  %v849_v61 = vmov 0.0  }
  0xe2   :  { %v335_v0 = vmax.f32 %v269_v60, 0.0  ;;  %v847_v60 = vmov 0.0|0.0   ;;  %764 = vmatprep.mubr.msk.f32.mxu0 %vm848_vm1, %v849_v61 }
  0xe3   :  { %v334_v1 = vmax.f32 %v264_v62, 0.0  ;;  %v688_v2 = vpop.f32.mrb[4].mxu0  ;;  %772 = vmatprep.subr.bf16.mxu1 %v771_v63  ;;  %803 = vmatprep.subr.bf16.mxu0 %v847_v60  ;;  %v372_v62 = vpop.permute.xlu1 %371 }
  0xe4   :  { %v279_v3 = vadd.f32 %v688_v2, %v86_v49  ;;  %v273_v4 = vpop.f32.mrb[5].mxu0  ;;  %774 = vmatpush3.bf16.msra.mxu1 %v771_v63 }
  0xe5   :  { %v775_v6 = vpack.c.bf16 %v335_v0, %v334_v1  ;;  %v274_v7 = vadd.f32 %v273_v4, %v81_v50  ;;  %v367_v63 = vpop.permute.xlu0 %366 }
  0xe6   :  { %v337_v9 = vmax.f32 %v279_v3, 0.0 }
  0xe7   :  { %v336_v10 = vmax.f32 %v274_v7, 0.0  ;;  %v691_v11 = vpop.f32.mrb[6].mxu0  ;;  %776 = vmatprep.subr.bf16.mxu1 %v775_v6  ;;  %v382_v0 = vpop.permute.xlu1 %381 }
  0xe8   :  { %v289_v12 = vadd.f32 %v691_v11, %v96_v56  ;;  %v283_v13 = vpop.f32.mrb[7].mxu0  ;;  %778 = vmatpush3.bf16.msra.mxu1 %v775_v6  ;;  %v352_v56 = vld [vmem:[%s1070_s3 + $0x20] sm:$0xff] }
  0xe9   :  { %v779_v14 = vpack.c.bf16 %v337_v9, %v336_v10  ;;  %v284_v15 = vadd.f32 %v283_v13, %v91_v59  ;;  %v355_v59 = vld [vmem:[%s1070_s3 + $0x38] sm:$0xff]  ;;  %v377_v2 = vpop.permute.xlu0 %376 }
  0xea   :  { %v339_v16 = vmax.f32 %v289_v12, 0.0 }
  0xeb   :  { %v338_v18 = vmax.f32 %v284_v15, 0.0  ;;  %v694_v19 = vpop.f32.mrb[8].mxu0  ;;  %780 = vmatprep.subr.bf16.mxu1 %v779_v14  ;;  %v392_v11 = vpop.permute.xlu1 %391 }
  0xec   :  { %v299_v21 = vadd.f32 %v694_v19, %v106_v5  ;;  %v293_v22 = vpop.f32.mrb[9].mxu0  ;;  %782 = vmatpush3.bf16.msra.mxu1 %v779_v14 }
  0xed   :  { %v783_v23 = vpack.c.bf16 %v339_v16, %v338_v18  ;;  %v294_v24 = vadd.f32 %v293_v22, %v101_v8  ;;  %v387_v14 = vpop.permute.xlu0 %386 }
  0xee   :  { %v341_v25 = vmax.f32 %v299_v21, 0.0 }
  0xef   :  { %v340_v26 = vmax.f32 %v294_v24, 0.0  ;;  %v697_v27 = vpop.f32.mrb[10].mxu0  ;;  %784 = vmatprep.subr.bf16.mxu1 %v783_v23 }
  0xf0   :  { %v309_v28 = vadd.f32 %v697_v27, %v116_v17  ;;  %v303_v29 = vpop.f32.mrb[11].mxu0  ;;  %786 = vmatpush3.bf16.msra.mxu1 %v783_v23  ;;  %v402_v23 = vpop.permute.xlu1 %401 }
  0xf1   :  { %v787_v31 = vpack.c.bf16 %v341_v25, %v340_v26  ;;  %v304_v32 = vadd.f32 %v303_v29, %v111_v20  ;;  %v397_v26 = vpop.permute.xlu0 %396 }
  0xf2   :  { %v343_v34 = vmax.f32 %v309_v28, 0.0 }
  0xf3   :  { %v342_v35 = vmax.f32 %v304_v32, 0.0  ;;  %v700_v36 = vpop.f32.mrb[12].mxu0  ;;  %788 = vmatprep.subr.bf16.mxu1 %v787_v31 }
  0xf4   :  { %v319_v37 = vadd.f32 %v700_v36, %v126_v30  ;;  %v313_v38 = vpop.f32.mrb[13].mxu0  ;;  %790 = vmatpush3.bf16.msra.mxu1 %v787_v31 }
  0xf5   :  { %v791_v39 = vpack.c.bf16 %v343_v34, %v342_v35  ;;  %v314_v40 = vadd.f32 %v313_v38, %v121_v33  ;;  %v517_v34 = vld [vmem:[%s1072_s5] sm:$0x1] }
  0xf6   :  { %v345_v41 = vmax.f32 %v319_v37, 0.0 }
  0xf7   :  { %v344_v43 = vmax.f32 %v314_v40, 0.0  ;;  %v703_v44 = vpop.f32.mrb[14].mxu0  ;;  %792 = vmatprep.subr.bf16.mxu1 %v791_v39 }
  0xf8   :  { %v329_v46 = vadd.f32 %v703_v44, %v136_v42  ;;  %v323_v47 = vpop.f32.mrb[15].mxu0  ;;  %794 = vmatpush3.bf16.msra.mxu1 %v791_v39 }
  0xf9   :  { %v795_v48 = vpack.c.bf16 %v345_v41, %v344_v43  ;;  %v324_v49 = vadd.f32 %v323_v47, %v131_v45 }
  0xfa   :  { %v347_v50 = vmax.f32 %v329_v46, 0.0 }
  0xfb   :  { %v346_v51 = vmax.f32 %v324_v49, 0.0  ;;  %796 = vmatprep.subr.bf16.mxu1 %v795_v48 }
  0xfc   :  { %798 = vmatpush3.bf16.msra.mxu1 %v795_v48 }
  0xfd   :  { %v799_v52 = vpack.c.bf16 %v347_v50, %v346_v51 }
  0xff   :  { %800 = vmatprep.subr.bf16.mxu1 %v799_v52 }
 0x100   :  { %802 = vmatpush3.bf16.msra.mxu1 %v799_v52 }
 0x103   :  { %737 = vmatmul.mubr.f32.vlgmr.msra.gmra.mrb[0].mxu1 %v349_v53 }
 0x104   :  { %739 = vmatprep.mubr.f32.mxu1 %v350_v54 }
 0x107   :  { %740 = vmatmul.mubr.f32.gmra.mrb[2].mxu1 %v351_v55 }
 0x108   :  { %742 = vmatprep.mubr.f32.mxu1 %v352_v56 }
 0x10b   :  { %743 = vmatmul.mubr.f32.gmra.mrb[4].mxu1 %v353_v57 }
 0x10c   :  { %745 = vmatprep.mubr.f32.mxu1 %v354_v58 }
 0x10f   :  { %746 = vmatmul.mubr.f32.gmra.mrb[6].mxu1 %v355_v59 }
 0x1d6   :  { %v738_v1 = vpop.f32.mrb[0].mxu1 }
 0x1d7   :  { %v476_v3 = vadd.f32 %v738_v1, %v372_v62  ;;  %v470_v4 = vpop.f32.mrb[1].mxu1 }
 0x1d8   :  { %v471_v5 = vadd.f32 %v470_v4, %v367_v63 }
 0x1d9   :  { %v510_v6 = vmax.f32 %v476_v3, 0.0 }
 0x1da   :  { %v509_v7 = vmax.f32 %v471_v5, 0.0  ;;  %v741_v8 = vpop.f32.mrb[2].mxu1 }
 0x1db   :  { %v486_v9 = vadd.f32 %v741_v8, %v382_v0  ;;  %v480_v10 = vpop.f32.mrb[3].mxu1 }
 0x1dc   :  { %v804_v12 = vpack.c.bf16 %v510_v6, %v509_v7  ;;  %v481_v13 = vadd.f32 %v480_v10, %v377_v2 }
 0x1dd   :  { %v512_v15 = vmax.f32 %v486_v9, 0.0 }
 0x1de   :  { %v511_v16 = vmax.f32 %v481_v13, 0.0  ;;  %v744_v17 = vpop.f32.mrb[4].mxu1  ;;  %805 = vmatpush3.bf16.msra.mxu0 %v804_v12 }
 0x1df   :  { %v496_v18 = vadd.f32 %v744_v17, %v392_v11  ;;  %v490_v19 = vpop.f32.mrb[5].mxu1  ;;  %806 = vmatprep.subr.bf16.mxu0 %v847_v60 }
 0x1e0   :  { %v807_v20 = vpack.c.bf16 %v512_v15, %v511_v16  ;;  %v491_v21 = vadd.f32 %v490_v19, %v387_v14 }
 0x1e1   :  { %v514_v22 = vmax.f32 %v496_v18, 0.0 }
 0x1e2   :  { %v513_v24 = vmax.f32 %v491_v21, 0.0  ;;  %v747_v25 = vpop.f32.mrb[6].mxu1  ;;  %808 = vmatpush3.bf16.msra.mxu0 %v807_v20 }
 0x1e3   :  { %v506_v27 = vadd.f32 %v747_v25, %v402_v23  ;;  %v500_v28 = vpop.f32.mrb[7].mxu1  ;;  %809 = vmatprep.subr.bf16.mxu0 %v847_v60 }
 0x1e4   :  { %v810_v29 = vpack.c.bf16 %v514_v22, %v513_v24  ;;  %v501_v30 = vadd.f32 %v500_v28, %v397_v26 }
 0x1e5   :  { %v516_v31 = vmax.f32 %v506_v27, 0.0 }
 0x1e6   :  { %v515_v32 = vmax.f32 %v501_v30, 0.0  ;;  %811 = vmatpush3.bf16.msra.mxu0 %v810_v29 }
 0x1e7   :  { %812 = vmatprep.subr.bf16.mxu0 %v847_v60 }
 0x1e8   :  { %v813_v33 = vpack.c.bf16 %v516_v31, %v515_v32 }
 0x1ea   :  { %814 = vmatpush3.bf16.msra.mxu0 %v813_v33 }
 0x1ed   :  { %765 = vmatmul.mubr.msk.f32.vlgmr.msra.gmra.mrb[16].mxu0 %vm518_vm2, %v517_v34 }
 0x2c0   :  { %v588_v35 = vpop.f32.mrb[16].mxu0 }
 0x2c1   :  { %593 = vst.msk [vmem:[#allocation2] sm:$0x1] %vm592_vm3, %v588_v35  ;;  %v766_v36 = vpop.f32.mrb[17].mxu0 }
 0x2c2   :  { %833 = shalt.err (!%p830_p4)
}
 0x2c3   :  { %s834_s5 = scalar_lea.hbm %s1073_s6, 16 }
 0x2c4   :  { %p835_p5 = scmp.ne.s32.totalorder %s1073_s6, %s834_s5  ;;  %p838_p6 = scmp.lt.u32.totalorder %s834_s5, %s1073_s6 }
 0x2c6   :  { %p840_p7 = pnand %p838_p6, %p835_p5 }
 0x2c8   :  { %843 = shalt.err (!%p840_p7)
}
 0x2c9   :  { %603 = dma.vmem_to_hbm [thread:$0]  %s601_s19, 16, %s1073_s6, [#allocation3]  }
 0x2ca   :  { %844 = dma.done.wait [#allocation3], 16  }
 0x2cb   :  { %845 = vsyncadd [#allocation3], 4294967280 }
 0x2cc   :  { %607 = vsyncpa [#allocation3], 1 }

</bundles_post_ra>
